<compile_context>
chip_gen: v7x
topology: tpu7x:2x2x1
jax: 0.10.0
libtpu: 0.0.40
codegen_flags: <defaults>
</compile_context>

<pallas_src>
import jax
import jax.numpy as jnp
from jax import lax
from jax.experimental import pallas as pl
from jax.experimental.pallas import tpu as pltpu
from math import sqrt


def _round_up(n, m):
    return ((n + m - 1) // m) * m


def _mlp_kernel(x_ref, w1_ref, b1_ref, w2_ref, b2_ref, w3_ref, b3_ref, o_ref):
    # x block arrives batch-major (TB, 15).  Compute in f32 regardless of the
    # HBM storage dtype (bf16 inputs are fine; v5e has no bf16 VPU/EUP).
    x = x_ref[...].astype(jnp.float32)

    # layer 1 (NT matmul): (12,15) . (TB,15)^T -> (12, TB)
    # The transposition onto the lane axis is folded into the MXU contraction,
    # so the rest of the kernel runs feature-major (batch on 128 lanes).
    h = lax.dot_general(w1_ref[...], x, (((1,), (1,)), ((), ())),
                        preferred_element_type=jnp.float32) + b1_ref[...]
    h = jnp.maximum(h, 0.0)

    # layer 2: (4,12) @ (12,TB) + (4,1) -> (4,TB)
    h = jnp.dot(w2_ref[...], h, preferred_element_type=jnp.float32) + b2_ref[...]
    h = jnp.maximum(h, 0.0)

    # layer 3: (1,4) @ (4,TB) + (1,1) -> (1,TB)
    h = jnp.dot(w3_ref[...], h, preferred_element_type=jnp.float32) + b3_ref[...]

    # sigmoid (exp runs on the EUP); lane-dense store to the (1,TB) output block
    o_ref[...] = (1.0 / (1.0 + jnp.exp(-h))).astype(o_ref.dtype)


def mlp_forward(x, params, *, tb=16384):
    """x: (B, 15) batch-major (PyTorch nn.Linear convention), f32 or bf16.
    Returns (B, 1) float32."""
    # weights (out,in), biases (out,1); keep them f32 (tiny, matmuls want f32 acc)
    w1, b1, w2, b2, w3, b3 = [p.astype(jnp.float32) for p in params]
    B, F = x.shape

    # Tiny batches: pad rows up to one 128-lane tile (trivial copy).  Larger
    # batches are NOT padded -- the final partial block is masked by Pallas.
    B_eff = B
    if B < 128:
        x = jnp.pad(x, ((0, 128 - B), (0, 0)))
        B_eff = 128

    # Lane-dense batch tile: multiple of 128, capped at `tb` and at the batch.
    TB = min(_round_up(tb, 128), _round_up(B_eff, 128))
    # v7x has 2 TensorCores: keep >= 2 tiles when halving still leaves >= 8192
    # rows per tile (per-step DMA stays well above the ~0.35us step overhead).
    if B_eff >= 2 * 8192 and pl.cdiv(B_eff, TB) < 2:
        TB = _round_up(pl.cdiv(B_eff, 2), 128)

    grid = (pl.cdiv(B_eff, TB),)
    resident = lambda a: pl.BlockSpec(a.shape, lambda i: (0, 0))

    weight_elems = w1.size + b1.size + w2.size + b2.size + w3.size + b3.size
    cost = pl.CostEstimate(
        flops=2 * B_eff * (15 * 12 + 12 * 4 + 4 * 1),
        transcendentals=B_eff,
        bytes_accessed=x.dtype.itemsize * B_eff * F
        + 4 * (B_eff + weight_elems),
    )

    out_t = pl.pallas_call(
        _mlp_kernel,
        out_shape=jax.ShapeDtypeStruct((1, B_eff), jnp.float32),
        grid=grid,
        in_specs=[
            pl.BlockSpec((TB, F), lambda i: (i, 0)),     # x tile, pipelined
            resident(w1), resident(b1),                  # weights: DMA'd once
            resident(w2), resident(b2),
            resident(w3), resident(b3),
        ],
        out_specs=pl.BlockSpec((1, TB), lambda i: (0, i)),   # lane-dense output
        compiler_params=pltpu.CompilerParams(
            dimension_semantics=("parallel",),
        ),
        cost_estimate=cost,
    )(x, w1, b1, w2, b2, w3, b3)

    return out_t[:, :B].T                                # (B, 1)


def init_params(key):
    """PyTorch nn.Linear default init: U(-1/sqrt(fan_in), 1/sqrt(fan_in)).
    Weights stored (out_features, in_features), biases (out_features, 1)."""
    def linear(key, fan_in, fan_out):
        kw, kb = jax.random.split(key)
        bound = 1.0 / sqrt(fan_in)
        w = jax.random.uniform(kw, (fan_out, fan_in), jnp.float32, -bound, bound)
        b = jax.random.uniform(kb, (fan_out, 1), jnp.float32, -bound, bound)
        return w, b

    k1, k2, k3 = jax.random.split(key, 3)
    w1, b1 = linear(k1, 15, 12)
    w2, b2 = linear(k2, 12, 4)
    w3, b3 = linear(k3, 4, 1)
    return (w1, b1, w2, b2, w3, b3)


def reference_forward(x, params):
    w1, b1, w2, b2, w3, b3 = params
    x = x.astype(jnp.float32)
    h = jnp.maximum(x @ w1.T + b1.T, 0.0)
    h = jnp.maximum(h @ w2.T + b2.T, 0.0)
    h = h @ w3.T + b3.T
    return jax.nn.sigmoid(h)


if __name__ == "__main__":
    key = jax.random.PRNGKey(0)
    kx, kp = jax.random.split(key)
    params = init_params(kp)

    # small batch consistent with the module's (B, 15) input
    B = 8
    x = jax.random.normal(kx, (B, 15), dtype=jnp.float32)
    out = jax.block_until_ready(mlp_forward(x, params))
    ref = reference_forward(x, params)
    assert out.shape == (B, 1), out.shape
    assert jnp.allclose(out, ref, atol=1e-5, rtol=1e-5), (out, ref)

    # ragged, multi-tile batch with a partial final block: exercises the
    # cdiv grid + masked-boundary path
    B2 = 300
    x2 = jax.random.normal(kx, (B2, 15), dtype=jnp.float32)
    out2 = jax.block_until_ready(mlp_forward(x2, params, tb=128))
    ref2 = reference_forward(x2, params)
    assert out2.shape == (B2, 1), out2.shape
    assert jnp.allclose(out2, ref2, atol=1e-5, rtol=1e-5), (out2, ref2)

    # bf16 input storage (halved HBM stream); compute stays f32 in-kernel,
    # so only input quantization error remains -> relaxed tolerance.
    out2b = jax.block_until_ready(mlp_forward(x2.astype(jnp.bfloat16), params,
                                              tb=128))
    assert out2b.shape == (B2, 1), out2b.shape
    assert jnp.allclose(out2b, ref2, atol=2e-2, rtol=2e-2), (out2b, ref2)

    print("KERNEL_OK")
</pallas_src>

<mosaic_0001>
module attributes {stable_mosaic.version = 11 : i64} {
  func.func @_mlp_kernel(%arg0: i32, %arg1: memref<128x15xf32, #tpu.memory_space<vmem>>, %arg2: memref<12x15xf32, #tpu.memory_space<vmem>>, %arg3: memref<12x1xf32, #tpu.memory_space<vmem>>, %arg4: memref<4x12xf32, #tpu.memory_space<vmem>>, %arg5: memref<4x1xf32, #tpu.memory_space<vmem>>, %arg6: memref<1x4xf32, #tpu.memory_space<vmem>>, %arg7: memref<1x1xf32, #tpu.memory_space<vmem>>, %arg8: memref<1x128xf32, #tpu.memory_space<vmem>>) attributes {dimension_semantics = [#tpu.dimension_semantics<parallel>], iteration_bounds = array<i64: 1>, scalar_prefetch = 0 : i64, scratch_operands = 0 : i64, tpu.core_type = #tpu.core_type<tc>, window_params = [{transform_indices = @transform_0, window_bounds = array<i64: 128, 15>}, {pipeline_mode = #tpu.pipeline_mode<synchronous>, transform_indices = @transform_1, window_bounds = array<i64: 12, 15>}, {pipeline_mode = #tpu.pipeline_mode<synchronous>, transform_indices = @transform_2, window_bounds = array<i64: 12, 1>}, {pipeline_mode = #tpu.pipeline_mode<synchronous>, transform_indices = @transform_3, window_bounds = array<i64: 4, 12>}, {pipeline_mode = #tpu.pipeline_mode<synchronous>, transform_indices = @transform_4, window_bounds = array<i64: 4, 1>}, {pipeline_mode = #tpu.pipeline_mode<synchronous>, transform_indices = @transform_5, window_bounds = array<i64: 1, 4>}, {pipeline_mode = #tpu.pipeline_mode<synchronous>, transform_indices = @transform_6, window_bounds = array<i64: 1, 1>}, {transform_indices = @transform_7, window_bounds = array<i64: 1, 128>}]} {
    %c0 = arith.constant 0 : index
    %c0_0 = arith.constant 0 : index
    %0 = vector.load %arg1[%c0, %c0_0] : memref<128x15xf32, #tpu.memory_space<vmem>>, vector<128x15xf32>
    %c0_1 = arith.constant 0 : index
    %c0_2 = arith.constant 0 : index
    %1 = vector.load %arg2[%c0_1, %c0_2] : memref<12x15xf32, #tpu.memory_space<vmem>>, vector<12x15xf32>
    %cst = arith.constant dense<0.000000e+00> : vector<12x128xf32>
    %2 = tpu.matmul %1, %0, %cst {dimension_numbers = #tpu.dot_dimension_numbers<[1], [1], [0], [0], [0, 0, 1, 0], [], []>} : vector<12x15xf32>, vector<128x15xf32>, vector<12x128xf32> -> vector<12x128xf32>
    %c0_3 = arith.constant 0 : index
    %c0_4 = arith.constant 0 : index
    %3 = vector.load %arg3[%c0_3, %c0_4] : memref<12x1xf32, #tpu.memory_space<vmem>>, vector<12x1xf32>
    %4 = vector.broadcast %3 : vector<12x1xf32> to vector<12x128xf32>
    %5 = arith.addf %2, %4 : vector<12x128xf32>
    %cst_5 = arith.constant 0.000000e+00 : f32
    %6 = vector.broadcast %cst_5 : f32 to vector<12x128xf32>
    %7 = arith.maximumf %5, %6 : vector<12x128xf32>
    %c0_6 = arith.constant 0 : index
    %c0_7 = arith.constant 0 : index
    %8 = vector.load %arg4[%c0_6, %c0_7] : memref<4x12xf32, #tpu.memory_space<vmem>>, vector<4x12xf32>
    %cst_8 = arith.constant dense<0.000000e+00> : vector<4x128xf32>
    %9 = tpu.matmul %8, %7, %cst_8 {dimension_numbers = #tpu.dot_dimension_numbers<[1], [0], [0], [1], [0, 0, 1, 1], [], []>} : vector<4x12xf32>, vector<12x128xf32>, vector<4x128xf32> -> vector<4x128xf32>
    %c0_9 = arith.constant 0 : index
    %c0_10 = arith.constant 0 : index
    %10 = vector.load %arg5[%c0_9, %c0_10] : memref<4x1xf32, #tpu.memory_space<vmem>>, vector<4x1xf32>
    %11 = vector.broadcast %10 : vector<4x1xf32> to vector<4x128xf32>
    %12 = arith.addf %9, %11 : vector<4x128xf32>
    %cst_11 = arith.constant 0.000000e+00 : f32
    %13 = vector.broadcast %cst_11 : f32 to vector<4x128xf32>
    %14 = arith.maximumf %12, %13 : vector<4x128xf32>
    %c0_12 = arith.constant 0 : index
    %c0_13 = arith.constant 0 : index
    %15 = vector.load %arg6[%c0_12, %c0_13] : memref<1x4xf32, #tpu.memory_space<vmem>>, vector<1x4xf32>
    %cst_14 = arith.constant dense<0.000000e+00> : vector<1x128xf32>
    %16 = tpu.matmul %15, %14, %cst_14 {dimension_numbers = #tpu.dot_dimension_numbers<[1], [0], [0], [1], [0, 0, 1, 1], [], []>} : vector<1x4xf32>, vector<4x128xf32>, vector<1x128xf32> -> vector<1x128xf32>
    %c0_15 = arith.constant 0 : index
    %c0_16 = arith.constant 0 : index
    %17 = vector.load %arg7[%c0_15, %c0_16] : memref<1x1xf32, #tpu.memory_space<vmem>>, vector<1x1xf32>
    %18 = vector.broadcast %17 : vector<1x1xf32> to vector<1x128xf32>
    %19 = arith.addf %16, %18 : vector<1x128xf32>
    %cst_17 = arith.constant 0.000000e+00 : f32
    %20 = vector.broadcast %cst_17 : f32 to vector<1x128xf32>
    %21 = arith.subf %20, %19 : vector<1x128xf32>
    %22 = math.exp %21 : vector<1x128xf32>
    %cst_18 = arith.constant 1.000000e+00 : f32
    %23 = vector.broadcast %cst_18 : f32 to vector<1x128xf32>
    %24 = arith.addf %23, %22 : vector<1x128xf32>
    %cst_19 = arith.constant 1.000000e+00 : f32
    %25 = vector.broadcast %cst_19 : f32 to vector<1x128xf32>
    %26 = arith.divf %25, %24 : vector<1x128xf32>
    %c0_20 = arith.constant 0 : index
    %c0_21 = arith.constant 0 : index
    %27 = vector.load %arg8[%c0_20, %c0_21] : memref<1x128xf32, #tpu.memory_space<vmem>>, vector<1x128xf32>
    tpu.vector_store %arg8[%c0_20, %c0_21], %26 {strides = array<i32>} : memref<1x128xf32, #tpu.memory_space<vmem>>, vector<1x128xf32>,
    return
  }
  func.func @transform_0(%arg0: i32) -> (i32, i32) {
    %c0_i32 = arith.constant 0 : i32
    %c0_i32_0 = arith.constant 0 : i32
    return %arg0, %c0_i32 : i32, i32
  }
  func.func @transform_1(%arg0: i32) -> (i32, i32) {
    %c0_i32 = arith.constant 0 : i32
    %c0_i32_0 = arith.constant 0 : i32
    %c0_i32_1 = arith.constant 0 : i32
    return %c0_i32, %c0_i32_0 : i32, i32
  }
  func.func @transform_2(%arg0: i32) -> (i32, i32) {
    %c0_i32 = arith.constant 0 : i32
    %c0_i32_0 = arith.constant 0 : i32
    %c0_i32_1 = arith.constant 0 : i32
    return %c0_i32, %c0_i32_0 : i32, i32
  }
  func.func @transform_3(%arg0: i32) -> (i32, i32) {
    %c0_i32 = arith.constant 0 : i32
    %c0_i32_0 = arith.constant 0 : i32
    %c0_i32_1 = arith.constant 0 : i32
    return %c0_i32, %c0_i32_0 : i32, i32
  }
  func.func @transform_4(%arg0: i32) -> (i32, i32) {
    %c0_i32 = arith.constant 0 : i32
    %c0_i32_0 = arith.constant 0 : i32
    %c0_i32_1 = arith.constant 0 : i32
    return %c0_i32, %c0_i32_0 : i32, i32
  }
  func.func @transform_5(%arg0: i32) -> (i32, i32) {
    %c0_i32 = arith.constant 0 : i32
    %c0_i32_0 = arith.constant 0 : i32
    %c0_i32_1 = arith.constant 0 : i32
    return %c0_i32, %c0_i32_0 : i32, i32
  }
  func.func @transform_6(%arg0: i32) -> (i32, i32) {
    %c0_i32 = arith.constant 0 : i32
    %c0_i32_0 = arith.constant 0 : i32
    %c0_i32_1 = arith.constant 0 : i32
    return %c0_i32, %c0_i32_0 : i32, i32
  }
  func.func @transform_7(%arg0: i32) -> (i32, i32) {
    %c0_i32 = arith.constant 0 : i32
    %c0_i32_0 = arith.constant 0 : i32
    return %c0_i32, %arg0 : i32, i32
  }
}

</mosaic_0001>

<bundles_post_ra>
// kernel: tpu_custom_call.1
= control target key start
LH: loop header
LB: loop body
LE: loop exit
PB: predicated region body
PF: predicated region fallthrough
CT: control target
= control target key end

     0   :  { %s740_s0 = inlined_call_operand.vmem [shape: f32[128,15], index: 0, kind: input, shape index: {}]   ;;  %s741_s1 = inlined_call_operand.vmem [shape: f32[12,15], index: 1, kind: input, shape index: {}]   ;;  %s742_s2 = inlined_call_operand.vmem [shape: f32[12,1], index: 2, kind: input, shape index: {}]   ;;  %s743_s3 = inlined_call_operand.vmem [shape: f32[4,12], index: 3, kind: input, shape index: {}]   ;;  %s744_s4 = inlined_call_operand.vmem [shape: f32[4,1], index: 4, kind: input, shape index: {}]   ;;  %s745_s5 = inlined_call_operand.vmem [shape: f32[1,4], index: 5, kind: input, shape index: {}]   ;;  %s746_s6 = inlined_call_operand.<no memory space> [shape: f32[1,1], index: 6, kind: input, shape index: {}]   ;;  %s747_s7 = inlined_call_operand.hbm [shape: f32[1,128], index: 7, kind: output, shape index: {}]  }
   0x1   :  { %v12_v0 = vstv %s746_s6 }
   0x2   :  { %13 = vst [vmem:[#allocation2] sm:$0x1] %v12_v0 }
   0x3   :  { %v29_v1 = vld [vmem:[%s740_s0] sm:$0xff]  ;;  %v30_v2 = vld [vmem:[%s740_s0 + $0x8] sm:$0xff]  ;;  %vm59_vm0 = vcmask 121856   ;;  %v31_v3 = vld [vmem:[%s740_s0 + $0x10] sm:$0xff]  ;;  %v566_v7 = vmov 0  }
   0x4   :  { %v478_v4 = vpack.c.bf16 %v30_v2, %v29_v1  ;;  %vm626_vm1 = vmpackc.low %vm59_vm0, %vm59_vm0  ;;  %v32_v6 = vld [vmem:[%s740_s0 + $0x18] sm:$0xff]  ;;  %536 = vset.pattern.permute.xlu0 %v566_v7  ;;  %537 = vset.pattern.permute.xlu1 %v566_v7  ;;  %v45_v9 = vld [vmem:[%s741_s1] sm:$0xff] }
   0x5   :  { %v484_v8 = vpack.c.bf16 %v32_v6, %v31_v3  ;;  %v33_v10 = vld [vmem:[%s740_s0 + $0x20] sm:$0xff]  ;;  %v34_v11 = vld [vmem:[%s740_s0 + $0x28] sm:$0xff]  ;;  %463 = vmatprep.mubr.msk.f32.mxu0 %vm59_vm0, %v45_v9 }
   0x6   :  { %480 = vmatprep.subr.msk.bf16.mxu0 %vm626_vm1, %v478_v4  ;;  %v47_v12 = vld [vmem:[%s742_s2] sm:$0xff] }
   0x7   :  { %483 = vmatpush3.bf16.xpose.msk.msra.mxu0 %vm626_vm1, %v478_v4  ;;  %51 = vperm.xlu0 %536, %v47_v12  }
   0x8   :  { %486 = vmatprep.subr.msk.bf16.mxu0 %vm626_vm1, %v484_v8 }
   0x9   :  { %14 = vsyncpa [#allocation4], 0  ;;  %v48_v13 = vld [vmem:[%s742_s2 + $0x8] sm:$0xf]  ;;  %v490_v14 = vpack.c.bf16 %v34_v11, %v33_v10  ;;  %v35_v15 = vld [vmem:[%s740_s0 + $0x30] sm:$0xff]  ;;  %v567_v31 = vmov 0.0|0.0   ;;  %v284_v51 = vlaneseq }
   0xa   :  { %v36_v16 = vld [vmem:[%s740_s0 + $0x38] sm:$0xff]  ;;  %v37_v18 = vld [vmem:[%s740_s0 + $0x40] sm:$0xff]  ;;  %v38_v19 = vld [vmem:[%s740_s0 + $0x48] sm:$0xff]  ;;  %526 = vmatprep.subr.bf16.mxu1 %v567_v31  ;;  %vm568_vm2 = vmmov 0   ;;  %v569_v32 = vmov 0.0   ;;  %vm202_vm3 = vcmask 1043456  }
   0xb   :  { %56 = vperm.xlu0 %536, %v48_v13   ;;  %v496_v17 = vpack.c.bf16 %v36_v16, %v35_v15  ;;  %v502_v20 = vpack.c.bf16 %v38_v19, %v37_v18  ;;  %v39_v21 = vld [vmem:[%s740_s0 + $0x50] sm:$0xff]  ;;  %v40_v22 = vld [vmem:[%s740_s0 + $0x58] sm:$0xff]  ;;  %v41_v24 = vld [vmem:[%s740_s0 + $0x60] sm:$0xff]  ;;  %470 = vmatprep.mubr.msk.f32.mxu1 %vm568_vm2, %v569_v32  ;;  %vm570_vm4 = vmmov 1   ;;  %vm198_vm6 = vcmask 97280  }
   0xc   :  { %v508_v23 = vpack.c.bf16 %v40_v22, %v39_v21  ;;  %v42_v25 = vld [vmem:[%s740_s0 + $0x68] sm:$0xff]  ;;  %v43_v27 = vld [vmem:[%s740_s0 + $0x70] sm:$0xff]  ;;  %v44_v28 = vld [vmem:[%s740_s0 + $0x78] sm:$0xff]  ;;  %vm288_vm7 = vcmask 31744   ;;  %v285_v52 = vshrl.u32 %v284_v51, 7 }
   0xd   :  { %v514_v26 = vpack.c.bf16 %v42_v25, %v41_v24  ;;  %v520_v29 = vpack.c.bf16 %v44_v28, %v43_v27  ;;  %v46_v30 = vld [vmem:[%s741_s1 + $0x8] sm:$0xf]  ;;  %v192_v33 = vld [vmem:[%s744_s4] sm:$0xf]  ;;  %vm528_vm5 = vmpackc.low %vm202_vm3, %vm570_vm4 }
   0xe   :  { %195 = vperm.xlu1 %537, %v192_v33   ;;  %v278_v34 = vld [vmem:[#allocation2] sm:$0x1]  ;;  %v286_v53 = vsub.s32 0, %v285_v52 }
   0xf   :  { %489 = vmatpush3.bf16.xpose.msk.msra.mxu0 %vm626_vm1, %v484_v8  ;;  %v191_v44 = vld [vmem:[%s743_s3] sm:$0xf]  ;;  %s571_s3 = smov [#allocation3]  }
  0x10   :  { %492 = vmatprep.subr.msk.bf16.mxu0 %vm626_vm1, %v490_v14  ;;  %v277_v50 = vld [vmem:[%s745_s5] sm:$0x1]  ;;  %s378_s5 = sshll.u32 %s571_s3, 4  ;;  %s379_s5 = int_to_ptr.vmem [resolvable:$true] %s378_s5 }
  0x11   :  { %s542_s20 = scalar_lea.vmem %s379_s5, 16  ;;  %s546_s21 = scalar_lea.vmem %s379_s5, 32 }
  0x12   :  { %281 = vperm.xlu1 %537, %v278_v34   ;;  %p543_p0 = scmp.ne.s32.totalorder %s379_s5, %s542_s20  ;;  %p547_p1 = scmp.lt.s32.totalorder %s379_s5, %s379_s5 }
  0x13   :  { %p548_p2 = scmp.lt.s32.totalorder %s546_s21, %s542_s20 }
  0x15   :  { %p549_p3 = por %p548_p2, %p547_p1 }
  0x17   :  { %495 = vmatpush3.bf16.xpose.msk.msra.mxu0 %vm626_vm1, %v490_v14  ;;  %p550_p4 = pnand %p549_p3, %p543_p0 }
  0x18   :  { %498 = vmatprep.subr.msk.bf16.mxu0 %vm626_vm1, %v496_v17 }
  0x1f   :  { %501 = vmatpush3.bf16.xpose.msk.msra.mxu0 %vm626_vm1, %v496_v17 }
  0x20   :  { %504 = vmatprep.subr.msk.bf16.mxu0 %vm626_vm1, %v502_v20 }
  0x27   :  { %507 = vmatpush3.bf16.xpose.msk.msra.mxu0 %vm626_vm1, %v502_v20 }
  0x28   :  { %510 = vmatprep.subr.msk.bf16.mxu0 %vm626_vm1, %v508_v23 }
  0x2f   :  { %513 = vmatpush3.bf16.xpose.msk.msra.mxu0 %vm626_vm1, %v508_v23 }
  0x30   :  { %516 = vmatprep.subr.msk.bf16.mxu0 %vm626_vm1, %v514_v26 }
  0x37   :  { %519 = vmatpush3.bf16.xpose.msk.msra.mxu0 %vm626_vm1, %v514_v26 }
  0x38   :  { %522 = vmatprep.subr.msk.bf16.mxu0 %vm626_vm1, %v520_v29 }
  0x3f   :  { %525 = vmatpush3.bf16.xpose.msk.msra.mxu0 %vm626_vm1, %v520_v29 }
  0x46   :  { %464 = vmatmul.mubr.msk.f32.vlgmr.msra.gmra.mrb[0].mxu0 %vm59_vm0, %v46_v30 }
  0x86   :  { %v52_v35 = vpop.permute.xlu0 %51 }
  0x8a   :  { %v57_v36 = vpop.permute.xlu0 %56 }
  0x8d   :  { %v196_v45 = vpop.permute.xlu1 %195 }
  0x91   :  { %v282_v54 = vpop.permute.xlu1 %281 }
  0x92   :  { %v287_v55 = vrot.slane %v282_v54, %v286_v53 }
 0x119   :  { %v465_v37 = vpop.f32.mrb[0].mxu0 }
 0x11a   :  { %v186_v38 = vadd.f32 %v465_v37, %v57_v36  ;;  %v180_v39 = vpop.f32.mrb[1].mxu0 }
 0x11b   :  { %v181_v40 = vadd.f32 %v180_v39, %v52_v35 }
 0x11c   :  { %v190_v41 = vmax.f32 %v186_v38, 0.0 }
 0x11d   :  { %v189_v42 = vmax.f32 %v181_v40, 0.0 }
 0x11f   :  { %v527_v43 = vpack.c.bf16 %v190_v41, %v189_v42 }
 0x121   :  { %529 = vmatpush3.bf16.msk.msra.mxu1 %vm528_vm5, %v527_v43 }
 0x122   :  { %473 = vmatprep.subr.mxu1 %v569_v32 }
 0x124   :  { %471 = vmatmul.mubr.msk.f32.vlgmr.msra.gmra.mrb[0].mxu1 %vm198_vm6, %v191_v44 }
 0x125   :  { %475 = vmatprep.mubr.msk.f32.mxu1 %vm568_vm2, %v569_v32 }
 0x1f7   :  { %v272_v46 = vpop.f32.mrb[0].mxu1 }
 0x1f8   :  { %v273_v47 = vadd.f32 %v272_v46, %v196_v45  ;;  %v472_v48 = vpop.f32.mrb[1].mxu1 }
 0x1fa   :  { %v276_v49 = vmax.f32 %v273_v47, 0.0 }
 0x1fc   :  { %474 = vmatpush3.msk.msra.mxu1 %vm202_vm3, %v276_v49 }
 0x1fd   :  { %476 = vmatmul.mubr.msk.f32.vlgmr.msra.gmra.mrb[2].mxu1 %vm288_vm7, %v277_v50 }
 0x2d0   :  { %v361_v56 = vpop.f32.mrb[2].mxu1 }
 0x2d1   :  { %v362_v57 = vadd.f32 %v361_v56, %v287_v55  ;;  %v477_v58 = vpop.f32.mrb[3].mxu1 }
 0x2d3   :  { %v365_v59 = vsub.f32 0.0, %v362_v57 }
 0x2d5   :  { %v366_v60 = vmul.f32 1.442695, %v365_v59 }
 0x2d7   :  { %538 = vpow2.f32 %v366_v60 }
 0x2e1   :  { %v539_v61 = vpop.eup %538 }
 0x2e2   :  { %v368_v62 = vadd.f32 1.0, %v539_v61 }
 0x2e4   :  { %540 = vrcp.f32 %v368_v62 }
 0x2ee   :  { %v541_v63 = vpop.eup %540 }
 0x2ef   :  { %371 = vst [vmem:[#allocation3] sm:$0x1] %v541_v63 }
 0x2f0   :  { %553 = shalt.err (!%p550_p4)
}
 0x2f1   :  { %s554_s2 = scalar_lea.hbm %s747_s7, 16 }
 0x2f2   :  { %p555_p5 = scmp.ne.s32.totalorder %s747_s7, %s554_s2  ;;  %p558_p6 = scmp.lt.u32.totalorder %s554_s2, %s747_s7 }
 0x2f4   :  { %p560_p7 = pnand %p558_p6, %p555_p5 }
 0x2f6   :  { %563 = shalt.err (!%p560_p7)
}
 0x2f7   :  { %381 = dma.vmem_to_hbm [thread:$0]  %s379_s5, 16, %s747_s7, [#allocation4]  }
 0x2f8   :  { %564 = dma.done.wait [#allocation4], 16  }
 0x2f9   :  { %565 = vsyncadd [#allocation4], 4294967280 }
 0x2fa   :  { %385 = vsyncpa [#allocation4], 1 }

</bundles_post_ra>
